<compile_context>
chip_gen: v7x
topology: tpu7x:2x2x1
jax: 0.10.0
libtpu: 0.0.40
codegen_flags: <defaults>
</compile_context>

<pallas_src>
import functools

import jax
import jax.numpy as jnp
from jax import lax
from jax.experimental import pallas as pl
from jax.experimental.pallas import tpu as pltpu


def _round_up(x: int, m: int) -> int:
    return ((x + m - 1) // m) * m


def _focal_loss_kernel(x_ref, t_ref, *rest, gamma, use_weight, batch, low_precision):
    """One batch tile of focal loss.

    x_ref:   (TB, C)      logits (native dtype)
    t_ref:   (TB, 1)      int32 target class indices
    w_ref:   (TB, 1)      f32 alpha[target] per-row weight (optional)
    out_ref: (1, 1, 128)  f32 per-tile partial sum in lane 0, zeros elsewhere
    """
    if use_weight:
        w_ref, out_ref = rest
    else:
        (out_ref,) = rest

    x = x_ref[...]
    if not low_precision:
        x = x.astype(jnp.float32)
    t = t_ref[...]                                      # (TB, 1) int32
    tb, c = x.shape

    # Validity mask for the ragged tail rows of the last tile (the unread part
    # of the block buffer can hold Inf/NaN garbage -> must use a select).
    row = pl.program_id(0) * tb + lax.broadcasted_iota(jnp.int32, (tb, 1), 0)
    valid = row < batch

    # Numerically stable per-row logsumexp.  Wide (TB, C) ops stay in the
    # input dtype (bf16 on v6e/v7x); the row accumulation is f32.
    m = jnp.max(x, axis=-1, keepdims=True)              # (TB, 1)
    e = jnp.exp(x - m)                                   # (TB, C)
    denom = jnp.sum(e, axis=-1, keepdims=True, dtype=jnp.float32)
    lse = m.astype(jnp.float32) + jnp.log(denom)         # (TB, 1) f32

    # Target logit via masked reduce (exactly one nonzero per row, so the sum
    # in the native dtype is exact) — no f32 one-hot temporary.
    col = lax.broadcasted_iota(jnp.int32, (tb, c), 1)
    logit_t = jnp.sum(jnp.where(col == t, x, 0.0), axis=-1,
                      keepdims=True).astype(jnp.float32)

    ce = jnp.maximum(lse - logit_t, 0.0)                 # clamp fp noise (ce >= 0)
    pt = jnp.exp(-ce)
    base = jnp.maximum(1.0 - pt, 0.0)                    # non-negative base for pow

    g = float(gamma)
    if g == int(g) and 0 <= int(g) <= 8:
        # Integer gamma: repeated multiplies, no EUP exp/log pair.
        mod = jnp.ones_like(base)
        for _ in range(int(g)):
            mod = mod * base
    else:
        mod = jnp.power(base, jnp.float32(g))

    focal = mod * ce                                     # (TB, 1) f32
    if use_weight:
        focal = w_ref[...] * focal                       # alpha[target]
    focal = jnp.where(valid, focal, 0.0)                 # zero the padded rows

    # Per-tile partial sum, written lane-dense (unmasked 128-lane store).
    partial = jnp.sum(focal, axis=0, keepdims=True)      # (1, 1) f32
    lane = lax.broadcasted_iota(jnp.int32, (1, 1, 128), 2)
    out_ref[...] = jnp.where(lane == 0, partial.reshape(1, 1, 1), 0.0)


def focal_loss(inputs, targets, gamma: float = 2.0, alpha=None,
               block_rows=None, low_precision_compute=None):
    """Pallas focal loss (mean over batch), matching the PyTorch FocalLoss.forward.

    inputs:  [B, C] float logits (f32/bf16/fp16 — DMA'd in native dtype)
    targets: [B] int labels
    alpha:   optional [C] float per-class weights
    block_rows: optional batch-tile override (mainly for testing multi-tile grids)
    low_precision_compute: keep the wide per-element math in the input dtype
        (defaults to True for bf16 inputs — good on v6e/v7x; pass False on v5e).
    """
    B, C = inputs.shape
    if not jnp.issubdtype(inputs.dtype, jnp.floating):
        inputs = inputs.astype(jnp.float32)
    dtype = inputs.dtype
    itemsize = jnp.dtype(dtype).itemsize

    if low_precision_compute is None:
        low_precision_compute = (dtype == jnp.bfloat16)
    low_precision = bool(low_precision_compute) and dtype != jnp.float32

    # Batch tile: ~4 MiB of native-dtype logits per block (double-buffered this
    # stays well under the VMEM limit below) to amortize the fixed per-step cost.
    if block_rows is None:
        tb = (4 * 1024 * 1024) // max(C * itemsize, 1)
        tb = max(8, min(4096, tb))
    else:
        tb = max(8, int(block_rows))
    tb -= tb % 8
    tb = max(8, min(tb, _round_up(B, 8)))
    if B > 16:
        # >= 2 grid steps so ("parallel",) can shard across v7x's 2 TensorCores.
        tb = max(8, min(tb, _round_up(-(-B // 2), 8)))
    num_tiles = -(-B // tb)

    t = targets.astype(jnp.int32).reshape(B, 1)

    use_weight = alpha is not None
    args = [inputs, t]
    in_specs = [
        # Full class dim as the block: no class padding, no extra HBM pass.
        pl.BlockSpec((tb, C), lambda i: (i, 0)),
        pl.BlockSpec((tb, 1), lambda i: (i, 0)),
    ]
    if use_weight:
        # O(B) gather in the wrapper instead of an in-kernel (B,C) reduce.
        w = alpha.astype(jnp.float32)[targets.astype(jnp.int32)].reshape(B, 1)
        args.append(w)
        in_specs.append(pl.BlockSpec((tb, 1), lambda i: (i, 0)))

    kernel = functools.partial(
        _focal_loss_kernel, gamma=float(gamma), use_weight=use_weight,
        batch=B, low_precision=low_precision)

    per_tile = pl.pallas_call(
        kernel,
        out_shape=jax.ShapeDtypeStruct((num_tiles, 1, 128), jnp.float32),
        grid=(num_tiles,),
        in_specs=in_specs,
        out_specs=pl.BlockSpec((1, 1, 128), lambda i: (i, 0, 0)),
        compiler_params=pltpu.CompilerParams(
            dimension_semantics=("parallel",),
            vmem_limit_bytes=48 * 1024 * 1024,
        ),
        cost_estimate=pl.CostEstimate(
            flops=6 * B * C,
            transcendentals=B * C + 2 * B,
            bytes_accessed=B * C * itemsize + 8 * B + 512 * num_tiles,
        ),
    )(*args)

    # Only lane 0 of each tile row is nonzero; divide by the TRUE batch size.
    return jnp.sum(per_tile) / jnp.float32(B)


def _focal_loss_ref(inputs, targets, gamma=2.0, alpha=None):
    """Pure-JAX reference (mirrors the PyTorch forward)."""
    logp = jax.nn.log_softmax(inputs.astype(jnp.float32), axis=-1)
    ce = -jnp.take_along_axis(logp, targets[:, None].astype(jnp.int32), axis=-1)[:, 0]
    pt = jnp.exp(-ce)
    fl = (1.0 - pt) ** gamma * ce
    if alpha is not None:
        fl = alpha[targets] * fl
    return jnp.mean(fl)


if __name__ == "__main__":
    key = jax.random.PRNGKey(0)
    k1, k2, k3 = jax.random.split(key, 3)

    # Small, deliberately unaligned shapes: C%128 != 0 and B%8 != 0 exercise the
    # full-class-dim block and in-kernel ragged-row masking (no wrapper padding).
    B, C = 13, 10
    logits = jax.random.normal(k1, (B, C), dtype=jnp.float32)
    labels = jax.random.randint(k2, (B,), 0, C, dtype=jnp.int32)
    alpha = jax.random.uniform(k3, (C,), dtype=jnp.float32) + 0.5

    # With alpha.
    out = jax.block_until_ready(focal_loss(logits, labels, gamma=2.0, alpha=alpha))
    ref = _focal_loss_ref(logits, labels, gamma=2.0, alpha=alpha)
    assert jnp.allclose(out, ref, rtol=1e-5, atol=1e-6), (out, ref)

    # Without alpha.
    out_na = jax.block_until_ready(focal_loss(logits, labels, gamma=2.0, alpha=None))
    ref_na = _focal_loss_ref(logits, labels, gamma=2.0, alpha=None)
    assert jnp.allclose(out_na, ref_na, rtol=1e-5, atol=1e-6), (out_na, ref_na)

    # Native bf16 logits: DMA'd and computed (wide ops) in bf16, f32 row accum.
    logits_bf16 = logits.astype(jnp.bfloat16)
    out_bf = jax.block_until_ready(focal_loss(logits_bf16, labels, gamma=2.0, alpha=alpha))
    ref_bf = _focal_loss_ref(logits_bf16.astype(jnp.float32), labels, gamma=2.0, alpha=alpha)
    assert jnp.allclose(out_bf, ref_bf, rtol=5e-2, atol=5e-3), (out_bf, ref_bf)

    # Multi-tile grid path (3 batch tiles), still small shapes.
    k4, k5 = jax.random.split(k1)
    B2 = 48
    logits2 = jax.random.normal(k4, (B2, C), dtype=jnp.float32)
    labels2 = jax.random.randint(k5, (B2,), 0, C, dtype=jnp.int32)
    out_mt = jax.block_until_ready(
        focal_loss(logits2, labels2, gamma=2.0, alpha=alpha, block_rows=16)
    )
    ref_mt = _focal_loss_ref(logits2, labels2, gamma=2.0, alpha=alpha)
    assert jnp.allclose(out_mt, ref_mt, rtol=1e-5, atol=1e-6), (out_mt, ref_mt)

    # Multi-tile + ragged tail (B not a multiple of the tile) in one shot.
    B3 = 43
    logits3 = jax.random.normal(k4, (B3, C), dtype=jnp.float32)
    labels3 = jax.random.randint(k5, (B3,), 0, C, dtype=jnp.int32)
    out_rt = jax.block_until_ready(
        focal_loss(logits3, labels3, gamma=2.0, alpha=alpha, block_rows=16)
    )
    ref_rt = _focal_loss_ref(logits3, labels3, gamma=2.0, alpha=alpha)
    assert jnp.allclose(out_rt, ref_rt, rtol=1e-5, atol=1e-6), (out_rt, ref_rt)

    print("KERNEL_OK")
</pallas_src>

<mosaic_0001>
module attributes {stable_mosaic.version = 11 : i64} {
  func.func @_focal_loss_kernel(%arg0: i32, %arg1: memref<16x10xf32, #tpu.memory_space<vmem>>, %arg2: memref<16x1xi32, #tpu.memory_space<vmem>>, %arg3: memref<16x1xf32, #tpu.memory_space<vmem>>, %arg4: memref<1x1x128xf32, #tpu.memory_space<vmem>>) attributes {dimension_semantics = [#tpu.dimension_semantics<parallel>], iteration_bounds = array<i64: 1>, scalar_prefetch = 0 : i64, scratch_operands = 0 : i64, tpu.core_type = #tpu.core_type<tc>, window_params = [{transform_indices = @transform_0, window_bounds = array<i64: 16, 10>}, {transform_indices = @transform_1, window_bounds = array<i64: 16, 1>}, {transform_indices = @transform_2, window_bounds = array<i64: 16, 1>}, {transform_indices = @transform_3, window_bounds = array<i64: 1, 1, 128>}]} {
    %c0 = arith.constant 0 : index
    %c0_0 = arith.constant 0 : index
    %0 = vector.load %arg1[%c0, %c0_0] : memref<16x10xf32, #tpu.memory_space<vmem>>, vector<16x10xf32>
    %c0_1 = arith.constant 0 : index
    %c0_2 = arith.constant 0 : index
    %1 = vector.load %arg2[%c0_1, %c0_2] : memref<16x1xi32, #tpu.memory_space<vmem>>, vector<16x1xi32>
    %c16_i32 = arith.constant 16 : i32
    %2 = arith.muli %arg0, %c16_i32 : i32
    %3 = tpu.iota {dimensions = array<i32: 0>} : vector<16x1xi32>
    %4 = vector.broadcast %2 : i32 to vector<16x1xi32>
    %5 = arith.addi %4, %3 : vector<16x1xi32>
    %c13_i32 = arith.constant 13 : i32
    %6 = vector.broadcast %c13_i32 : i32 to vector<16x1xi32>
    %7 = arith.cmpi slt, %5, %6 : vector<16x1xi32>
    %cst = arith.constant dense<0xFF800000> : vector<16xf32>
    %8 = vector.multi_reduction <maximumf>, %0, %cst [1] : vector<16x10xf32> to vector<16xf32>
    %9 = vector.shape_cast %8 : vector<16xf32> to vector<16x1xf32>
    %10 = vector.broadcast %9 : vector<16x1xf32> to vector<16x10xf32>
    %11 = arith.subf %0, %10 : vector<16x10xf32>
    %12 = math.exp %11 : vector<16x10xf32>
    %cst_3 = arith.constant dense<0.000000e+00> : vector<16xf32>
    %13 = vector.multi_reduction <add>, %12, %cst_3 [1] : vector<16x10xf32> to vector<16xf32>
    %14 = vector.shape_cast %13 : vector<16xf32> to vector<16x1xf32>
    %15 = math.log %14 : vector<16x1xf32>
    %16 = arith.addf %9, %15 : vector<16x1xf32>
    %17 = tpu.iota {dimensions = array<i32: 1>} : vector<16x10xi32>
    %18 = vector.broadcast %1 : vector<16x1xi32> to vector<16x10xi32>
    %19 = arith.cmpi eq, %17, %18 : vector<16x10xi32>
    %cst_4 = arith.constant 0.000000e+00 : f32
    %20 = vector.broadcast %cst_4 : f32 to vector<16x10xf32>
    %21 = arith.select %19, %0, %20 : vector<16x10xi1>, vector<16x10xf32>
    %cst_5 = arith.constant dense<0.000000e+00> : vector<16xf32>
    %22 = vector.multi_reduction <add>, %21, %cst_5 [1] : vector<16x10xf32> to vector<16xf32>
    %23 = vector.shape_cast %22 : vector<16xf32> to vector<16x1xf32>
    %24 = arith.subf %16, %23 : vector<16x1xf32>
    %cst_6 = arith.constant 0.000000e+00 : f32
    %25 = vector.broadcast %cst_6 : f32 to vector<16x1xf32>
    %26 = arith.maximumf %24, %25 : vector<16x1xf32>
    %cst_7 = arith.constant 0.000000e+00 : f32
    %27 = vector.broadcast %cst_7 : f32 to vector<16x1xf32>
    %28 = arith.subf %27, %26 : vector<16x1xf32>
    %29 = math.exp %28 : vector<16x1xf32>
    %cst_8 = arith.constant 1.000000e+00 : f32
    %30 = vector.broadcast %cst_8 : f32 to vector<16x1xf32>
    %31 = arith.subf %30, %29 : vector<16x1xf32>
    %cst_9 = arith.constant 0.000000e+00 : f32
    %32 = vector.broadcast %cst_9 : f32 to vector<16x1xf32>
    %33 = arith.maximumf %31, %32 : vector<16x1xf32>
    %cst_10 = arith.constant 1.000000e+00 : f32
    %34 = vector.broadcast %cst_10 : f32 to vector<16x1xf32>
    %35 = arith.mulf %34, %33 : vector<16x1xf32>
    %36 = arith.mulf %35, %33 : vector<16x1xf32>
    %37 = arith.mulf %36, %26 : vector<16x1xf32>
    %c0_11 = arith.constant 0 : index
    %c0_12 = arith.constant 0 : index
    %38 = vector.load %arg3[%c0_11, %c0_12] : memref<16x1xf32, #tpu.memory_space<vmem>>, vector<16x1xf32>
    %39 = arith.mulf %38, %37 : vector<16x1xf32>
    %cst_13 = arith.constant 0.000000e+00 : f32
    %40 = vector.broadcast %cst_13 : f32 to vector<16x1xf32>
    %41 = arith.select %7, %39, %40 : vector<16x1xi1>, vector<16x1xf32>
    %cst_14 = arith.constant dense<0.000000e+00> : vector<1xf32>
    %42 = vector.multi_reduction <add>, %41, %cst_14 [0] : vector<16x1xf32> to vector<1xf32>
    %43 = vector.shape_cast %42 : vector<1xf32> to vector<1x1xf32>
    %44 = tpu.iota {dimensions = array<i32: 2>} : vector<1x1x128xi32>
    %c0_i32 = arith.constant 0 : i32
    %45 = vector.broadcast %c0_i32 : i32 to vector<1x1x128xi32>
    %46 = arith.cmpi eq, %44, %45 : vector<1x1x128xi32>
    %47 = vector.shape_cast %43 : vector<1x1xf32> to vector<1x1x1xf32>
    %cst_15 = arith.constant 0.000000e+00 : f32
    %48 = vector.shape_cast %47 : vector<1x1x1xf32> to vector<1x1x1xf32>
    %49 = vector.broadcast %48 : vector<1x1x1xf32> to vector<1x1x128xf32>
    %50 = vector.broadcast %cst_15 : f32 to vector<1x1x128xf32>
    %51 = arith.select %46, %49, %50 : vector<1x1x128xi1>, vector<1x1x128xf32>
    %c0_16 = arith.constant 0 : index
    %c0_17 = arith.constant 0 : index
    %c0_18 = arith.constant 0 : index
    %52 = vector.load %arg4[%c0_16, %c0_17, %c0_18] : memref<1x1x128xf32, #tpu.memory_space<vmem>>, vector<1x1x128xf32>
    tpu.vector_store %arg4[%c0_16, %c0_17, %c0_18], %51 {strides = array<i32>} : memref<1x1x128xf32, #tpu.memory_space<vmem>>, vector<1x1x128xf32>,
    return
  }
  func.func @transform_0(%arg0: i32) -> (i32, i32) {
    %c0_i32 = arith.constant 0 : i32
    %c0_i32_0 = arith.constant 0 : i32
    return %arg0, %c0_i32 : i32, i32
  }
  func.func @transform_1(%arg0: i32) -> (i32, i32) {
    %c0_i32 = arith.constant 0 : i32
    %c0_i32_0 = arith.constant 0 : i32
    return %arg0, %c0_i32 : i32, i32
  }
  func.func @transform_2(%arg0: i32) -> (i32, i32) {
    %c0_i32 = arith.constant 0 : i32
    %c0_i32_0 = arith.constant 0 : i32
    return %arg0, %c0_i32 : i32, i32
  }
  func.func @transform_3(%arg0: i32) -> (i32, i32, i32) {
    %c0_i32 = arith.constant 0 : i32
    %c0_i32_0 = arith.constant 0 : i32
    %c0_i32_1 = arith.constant 0 : i32
    return %arg0, %c0_i32, %c0_i32_0 : i32, i32, i32
  }
}

</mosaic_0001>

<bundles_post_ra>
// kernel: tpu_custom_call.1
= control target key start
LH: loop header
LB: loop body
LE: loop exit
PB: predicated region body
PF: predicated region fallthrough
CT: control target
= control target key end

     0   :  { %vm28_vm0 = vcmask 80896   ;;  %v167_v4 = vmov 0   ;;  %s230_s0 = inlined_call_operand.vmem [shape: f32[13,10], index: 0, kind: input, shape index: {}]   ;;  %s231_s1 = inlined_call_operand.vmem [shape: s32[13,1], index: 1, kind: input, shape index: {}]   ;;  %s232_s2 = inlined_call_operand.vmem [shape: f32[13,1], index: 2, kind: input, shape index: {}]   ;;  %s233_s3 = inlined_call_operand.hbm [shape: f32[1,1,128], index: 3, kind: output, shape index: {}]  }
   0x1   :  { %v16_v0 = vld [vmem:[%s230_s0 + $0x8] sm:$0xff]  ;;  %v15_v1 = vld [vmem:[%s230_s0] sm:$0xff]  ;;  %129 = vset.pattern.permute.xlu1 %v167_v4  ;;  %130 = vset.pattern.permute.xlu0 %v167_v4 }
   0x2   :  { %v18_v2 = vld [vmem:[%s231_s1 + $0x8] sm:$0xff]  ;;  %v32_v3 = vsel %vm28_vm0, %v16_v0, -inf }
   0x3   :  { %8 = vsyncpa [#allocation3], 0  ;;  %33 = vmax.xlane.f32.xlu0 %v32_v3  ;;  %59 = vperm.xlu1 %129, %v18_v2   ;;  %v29_v5 = vsel %vm28_vm0, %v15_v1, -inf  ;;  %v17_v6 = vld [vmem:[%s231_s1] sm:$0xff]  ;;  %v20_v11 = vlaneseq  ;;  %v90_v51 = vld [vmem:[%s232_s2 + $0x8] sm:$0xff]  ;;  %vm95_vm4 = vcmask 7168  }
   0x4   :  { %v89_v56 = vld [vmem:[%s232_s2] sm:$0xff]  ;;  %s168_s22 = smov [#allocation2]  }
   0x5   :  { %v203_v15 = vand.u32 127, %v20_v11  ;;  %v21_v44 = vshrl.u32 %v20_v11, 7  ;;  %s119_s23 = sshll.u32 %s168_s22, 4  ;;  %s120_s23 = int_to_ptr.vmem [resolvable:$true] %s119_s23 }
   0x6   :  { %s143_s2 = scalar_lea.vmem %s120_s23, 16  ;;  %s147_s24 = scalar_lea.vmem %s120_s23, 32 }
   0x7   :  { %30 = vmax.xlane.f32.xlu0 %v29_v5  ;;  %56 = vperm.xlu1 %129, %v17_v6   ;;  %v22_v48 = vadd.s32 8, %v21_v44  ;;  %vm105_vm5 = vcmp.eq.s32.totalorder %v203_v15, 0  ;;  %p144_p0 = scmp.ne.s32.totalorder %s120_s23, %s143_s2  ;;  %p148_p1 = scmp.lt.s32.totalorder %s120_s23, %s120_s23 }
   0x8   :  { %p149_p2 = scmp.lt.s32.totalorder %s147_s24, %s143_s2 }
   0x9   :  { %vm27_vm3 = vcmp.lt.s32.totalorder %v22_v48, 13 }
   0xa   :  { %p150_p3 = por %p149_p2, %p148_p1 }
   0xc   :  { %p151_p4 = pnand %p150_p3, %p144_p0 }
  0x82   :  { %v60_v14 = vpop.permute.xlu1 %59 }
  0x83   :  { %vm62_vm1 = vcmp.eq.s32.totalorder %v203_v15, %v60_v14 }
  0x84   :  { %v64_v18 = vsel %vm62_vm1, %v16_v0, 0.0 }
  0x85   :  { %v68_v20 = vsel %vm28_vm0, %v64_v18, 0.0 }
  0x86   :  { %v57_v16 = vpop.permute.xlu1 %56 }
  0x87   :  { %vm61_vm2 = vcmp.eq.s32.totalorder %v203_v15, %v57_v16 }
  0x88   :  { %v63_v22 = vsel %vm61_vm2, %v15_v1, 0.0 }
  0x89   :  { %v65_v24 = vsel %vm28_vm0, %v63_v22, 0.0 }
  0x90   :  { %v34_v7 = vpop.xlane.xlu0 %33 }
  0x91   :  { %v36_v8 = vsub.f32 %v16_v0, %v34_v7 }
  0x93   :  { %v39_v9 = vmul.f32 1.442695, %v36_v8 }
  0x94   :  { %v31_v10 = vpop.xlane.xlu0 %30 }
  0x95   :  { %131 = vpow2.f32 %v39_v9  ;;  %v35_v12 = vsub.f32 %v15_v1, %v31_v10 }
  0x97   :  { %v37_v13 = vmul.f32 1.442695, %v35_v12 }
  0x99   :  { %133 = vpow2.f32 %v37_v13 }
  0x9f   :  { %v132_v17 = vpop.eup %131 }
  0xa0   :  { %v44_v19 = vsel %vm28_vm0, %v132_v17, 0.0 }
  0xa1   :  { %45 = vadd.xlane.f32.xlu0 %v44_v19 }
  0xa3   :  { %v134_v21 = vpop.eup %133 }
  0xa4   :  { %v41_v23 = vsel %vm28_vm0, %v134_v21, 0.0 }
  0xa5   :  { %42 = vadd.xlane.f32.xlu1 %v41_v23  ;;  %69 = vadd.xlane.f32.xlu0 %v68_v20 }
  0xa9   :  { %66 = vadd.xlane.f32.xlu0 %v65_v24 }
 0x12e   :  { %v46_v25 = vpop.xlane.xlu0 %45 }
 0x12f   :  { %135 = vlog2.f32 %v46_v25 }
 0x132   :  { %v43_v26 = vpop.xlane.xlu1 %42  ;;  %v70_v29 = vpop.xlane.xlu0 %69 }
 0x133   :  { %137 = vlog2.f32 %v43_v26 }
 0x136   :  { %v67_v36 = vpop.xlane.xlu0 %66 }
 0x139   :  { %v136_v27 = vpop.eup %135 }
 0x13a   :  { %v50_v28 = vmul.f32 0.6931472, %v136_v27 }
 0x13c   :  { %v52_v30 = vadd.f32 %v50_v28, %v34_v7 }
 0x13d   :  { %v138_v31 = vpop.eup %137 }
 0x13e   :  { %v48_v32 = vmul.f32 0.6931472, %v138_v31  ;;  %v72_v33 = vsub.f32 %v52_v30, %v70_v29 }
 0x140   :  { %v74_v34 = vmax.f32 %v72_v33, 0.0  ;;  %v51_v35 = vadd.f32 %v48_v32, %v31_v10 }
 0x142   :  { %v76_v37 = vsub.f32 0.0, %v74_v34  ;;  %v71_v38 = vsub.f32 %v51_v35, %v67_v36 }
 0x144   :  { %v79_v39 = vmul.f32 1.442695, %v76_v37  ;;  %v73_v40 = vmax.f32 %v71_v38, 0.0 }
 0x146   :  { %139 = vpow2.f32 %v79_v39  ;;  %v75_v41 = vsub.f32 0.0, %v73_v40 }
 0x148   :  { %v77_v42 = vmul.f32 1.442695, %v75_v41 }
 0x14a   :  { %141 = vpow2.f32 %v77_v42 }
 0x150   :  { %v140_v43 = vpop.eup %139 }
 0x151   :  { %v82_v45 = vsub.f32 1.0, %v140_v43 }
 0x153   :  { %v84_v46 = vmax.f32 %v82_v45, 0.0 }
 0x154   :  { %v142_v47 = vpop.eup %141 }
 0x155   :  { %v86_v49 = vmul.f32 %v84_v46, %v84_v46  ;;  %v81_v50 = vsub.f32 1.0, %v142_v47 }
 0x157   :  { %v88_v52 = vmul.f32 %v86_v49, %v74_v34  ;;  %v83_v53 = vmax.f32 %v81_v50, 0.0 }
 0x159   :  { %v92_v54 = vmul.f32 %v90_v51, %v88_v52  ;;  %v85_v55 = vmul.f32 %v83_v53, %v83_v53 }
 0x15b   :  { %v87_v57 = vmul.f32 %v85_v55, %v73_v40  ;;  %v94_v58 = vsel %vm27_vm3, %v92_v54, 0.0 }
 0x15c   :  { %v97_v60 = vsel %vm95_vm4, %v94_v58, 0.0 }
 0x15d   :  { %v91_v59 = vmul.f32 %v89_v56, %v87_v57 }
 0x15f   :  { %v96_v61 = vsel %vm95_vm4, %v91_v59, 0.0 }
 0x160   :  { %v98_v62 = vadd.f32 %v97_v60, %v96_v61 }
 0x162   :  { %v99_v63 = vrot.slane %v98_v62, 4 }
 0x164   :  { %v100_v0 = vadd.f32 %v99_v63, %v98_v62 }
 0x166   :  { %v101_v1 = vrot.slane %v100_v0, 2 }
 0x168   :  { %v102_v2 = vadd.f32 %v101_v1, %v100_v0 }
 0x16a   :  { %v103_v3 = vrot.slane %v102_v2, 1 }
 0x16c   :  { %v104_v4 = vadd.f32 %v103_v3, %v102_v2 }
 0x16e   :  { %108 = vperm.xlu0 %130, %v104_v4  }
 0x1ed   :  { %v109_v5 = vpop.permute.xlu0 %108 }
 0x1ee   :  { %v111_v6 = vsel %vm105_vm5, %v109_v5, 0.0 }
 0x1ef   :  { %112 = vst [vmem:[#allocation2] sm:$0x1] %v111_v6 }
 0x1f0   :  { %154 = shalt.err (!%p151_p4)
}
 0x1f1   :  { %s155_s27 = scalar_lea.hbm %s233_s3, 16 }
 0x1f2   :  { %p156_p5 = scmp.ne.s32.totalorder %s233_s3, %s155_s27  ;;  %p159_p6 = scmp.lt.u32.totalorder %s155_s27, %s233_s3 }
 0x1f4   :  { %p161_p7 = pnand %p159_p6, %p156_p5 }
 0x1f6   :  { %164 = shalt.err (!%p161_p7)
}
 0x1f7   :  { %122 = dma.vmem_to_hbm [thread:$0]  %s120_s23, 16, %s233_s3, [#allocation3]  }
 0x1f8   :  { %165 = dma.done.wait [#allocation3], 16  }
 0x1f9   :  { %166 = vsyncadd [#allocation3], 4294967280 }
 0x1fa   :  { %126 = vsyncpa [#allocation3], 1 }

</bundles_post_ra>
